<compile_context>
chip_gen: v7x
topology: tpu7x:2x2x1
jax: 0.10.0
libtpu: 0.0.40
codegen_flags: <defaults>
</compile_context>

<pallas_src>
import jax
import jax.numpy as jnp
from jax.experimental import pallas as pl
from jax.experimental.pallas import tpu as pltpu


def _add_kernel(a_ref, b_ref, o_ref):
    # Elementwise add on the current VMEM tile (VPU path).
    o_ref[...] = a_ref[...] + b_ref[...]


def _choose_cols(total: int):
    """Pick a lane-dense column width (multiple of 128) that divides `total`."""
    for c in (2048, 1024, 512, 256, 128):
        if total % c == 0:
            return c
    return None


def _pallas_add_2d(a2: jax.Array, b2: jax.Array, tm: int) -> jax.Array:
    rows, cols = a2.shape
    itemsize = jnp.dtype(a2.dtype).itemsize
    grid = (pl.cdiv(rows, tm),)

    tile_bytes = tm * cols * itemsize
    # 3 arrays (a, b, out) x 2 pipeline buffers + headroom; clamp well under
    # v7x's 64 MiB physical VMEM (v5e scoped default is only 16 MiB).
    vmem_limit = int(min(3 * 2 * tile_bytes + (4 << 20), 48 << 20))

    nbytes = rows * cols * itemsize
    cost = pl.CostEstimate(
        flops=rows * cols, transcendentals=0, bytes_accessed=3 * nbytes
    )

    return pl.pallas_call(
        _add_kernel,
        out_shape=jax.ShapeDtypeStruct((rows, cols), a2.dtype),
        grid_spec=pltpu.PrefetchScalarGridSpec(
            num_scalar_prefetch=0,
            grid=grid,
            in_specs=[
                pl.BlockSpec((tm, cols), lambda i: (i, 0)),
                pl.BlockSpec((tm, cols), lambda i: (i, 0)),
            ],
            out_specs=pl.BlockSpec((tm, cols), lambda i: (i, 0)),
        ),
        compiler_params=pltpu.CompilerParams(
            dimension_semantics=("parallel",),
            vmem_limit_bytes=vmem_limit,
        ),
        cost_estimate=cost,
    )(a2, b2)


def test_forward(a: jax.Array, b: jax.Array, *, target_tile_bytes: int = 1 << 20) -> jax.Array:
    """Pallas equivalent of Test().forward(inputA, inputB) == inputA + inputB."""
    assert a.shape == b.shape and a.dtype == b.dtype
    orig_shape = a.shape
    total = a.size
    itemsize = jnp.dtype(a.dtype).itemsize

    # Lane-dense factorization: cols is a big multiple of 128 when possible.
    cols = _choose_cols(total)
    if cols is None:
        # Rare fallback (total not a multiple of 128): keep the original
        # trailing dim on the lane axis; block cols == full array dim is legal.
        cols = orig_shape[-1] if a.ndim >= 1 else 1
    rows = total // cols

    a2 = a.reshape(rows, cols)
    b2 = b.reshape(rows, cols)

    # Sublane granularity: 8 (32-bit), 16 (16-bit), 32 (8-bit).
    sub = 32 // itemsize if itemsize in (1, 2, 4) else 8

    if rows * cols * itemsize <= target_tile_bytes or rows < sub:
        # Fast path: whole array is one block -> single grid step, no masking.
        tm = rows
    else:
        budget_rows = max(sub, target_tile_bytes // (cols * itemsize))
        tm = min(rows, budget_rows)
        tm = max(sub, (tm // sub) * sub)

    out2 = _pallas_add_2d(a2, b2, tm)
    return out2.reshape(orig_shape)


if __name__ == "__main__":
    key = jax.random.PRNGKey(0)
    k1, k2, k3, k4 = jax.random.split(key, 4)

    # Small shape consistent with a generic binary-op module (tiny fast path).
    shape_small = (2, 4, 16, 16)
    a_s = jax.random.normal(k1, shape_small, dtype=jnp.float32)
    b_s = jax.random.normal(k2, shape_small, dtype=jnp.float32)
    out_s = test_forward(a_s, b_s)
    jax.block_until_ready(out_s)
    ref_s = a_s + b_s
    assert out_s.shape == ref_s.shape and out_s.dtype == ref_s.dtype
    assert jnp.allclose(out_s, ref_s, atol=1e-6, rtol=1e-6)

    # Slightly larger shape to exercise the tiled (multi-block, parallel) path.
    shape_big = (16, 16, 32, 64)
    a_b = jax.random.normal(k3, shape_big, dtype=jnp.float32)
    b_b = jax.random.normal(k4, shape_big, dtype=jnp.float32)
    out_b = test_forward(a_b, b_b)
    jax.block_until_ready(out_b)
    ref_b = a_b + b_b
    assert out_b.shape == ref_b.shape and out_b.dtype == ref_b.dtype
    assert jnp.allclose(out_b, ref_b, atol=1e-6, rtol=1e-6)

    print("KERNEL_OK")
</pallas_src>

<mosaic_0001>
module attributes {stable_mosaic.version = 11 : i64} {
  func.func @_add_kernel(%arg0: i32, %arg1: memref<1x2048xf32, #tpu.memory_space<vmem>>, %arg2: memref<1x2048xf32, #tpu.memory_space<vmem>>, %arg3: memref<1x2048xf32, #tpu.memory_space<vmem>>) attributes {dimension_semantics = [#tpu.dimension_semantics<parallel>], iteration_bounds = array<i64: 1>, scalar_prefetch = 0 : i64, scratch_operands = 0 : i64, tpu.core_type = #tpu.core_type<tc>, window_params = [{transform_indices = @transform_0, window_bounds = array<i64: 1, 2048>}, {transform_indices = @transform_1, window_bounds = array<i64: 1, 2048>}, {transform_indices = @transform_2, window_bounds = array<i64: 1, 2048>}]} {
    %c0 = arith.constant 0 : index
    %c0_0 = arith.constant 0 : index
    %0 = vector.load %arg1[%c0, %c0_0] : memref<1x2048xf32, #tpu.memory_space<vmem>>, vector<1x2048xf32>
    %c0_1 = arith.constant 0 : index
    %c0_2 = arith.constant 0 : index
    %1 = vector.load %arg2[%c0_1, %c0_2] : memref<1x2048xf32, #tpu.memory_space<vmem>>, vector<1x2048xf32>
    %2 = arith.addf %0, %1 : vector<1x2048xf32>
    %c0_3 = arith.constant 0 : index
    %c0_4 = arith.constant 0 : index
    %3 = vector.load %arg3[%c0_3, %c0_4] : memref<1x2048xf32, #tpu.memory_space<vmem>>, vector<1x2048xf32>
    tpu.vector_store %arg3[%c0_3, %c0_4], %2 {strides = array<i32>} : memref<1x2048xf32, #tpu.memory_space<vmem>>, vector<1x2048xf32>,
    return
  }
  func.func @transform_0(%arg0: i32) -> (i32, i32) {
    %c0_i32 = arith.constant 0 : i32
    %c0_i32_0 = arith.constant 0 : i32
    return %arg0, %c0_i32 : i32, i32
  }
  func.func @transform_1(%arg0: i32) -> (i32, i32) {
    %c0_i32 = arith.constant 0 : i32
    %c0_i32_0 = arith.constant 0 : i32
    return %arg0, %c0_i32 : i32, i32
  }
  func.func @transform_2(%arg0: i32) -> (i32, i32) {
    %c0_i32 = arith.constant 0 : i32
    %c0_i32_0 = arith.constant 0 : i32
    return %arg0, %c0_i32 : i32, i32
  }
}

</mosaic_0001>

<bundles_post_ra>
// kernel: tpu_custom_call.1
= control target key start
LH: loop header
LB: loop body
LE: loop exit
PB: predicated region body
PF: predicated region fallthrough
CT: control target
= control target key end

     0   :  { %7 = vsyncpa [#allocation3], 0  ;;  %s189_s0 = inlined_call_operand.hbm [shape: f32[1,2048], index: 0, kind: input, shape index: {}]   ;;  %s190_s1 = inlined_call_operand.hbm [shape: f32[1,2048], index: 1, kind: input, shape index: {}]   ;;  %s191_s2 = inlined_call_operand.hbm [shape: f32[1,2048], index: 2, kind: output, shape index: {}]  }
   0x1   :  { %8 = vsyncpa [#allocation6], 0 }
   0x2   :  { %9 = vsyncpa [#allocation4], 0  ;;  %s135_s9 = smov [#allocation2]   ;;  %s136_s11 = smov [#allocation5]  }
   0x3   :  { %s16_s10 = sshll.u32 %s135_s9, 4  ;;  %s26_s12 = sshll.u32 %s136_s11, 4  ;;  %s17_s10 = int_to_ptr.vmem [resolvable:$true] %s16_s10  ;;  %s27_s12 = int_to_ptr.vmem [resolvable:$true] %s26_s12 }
   0x4   :  { %s63_s15 = scalar_lea.hbm %s189_s0, 256 }
   0x5   :  { %p64_p0 = scmp.ne.s32.totalorder %s189_s0, %s63_s15  ;;  %p67_p1 = scmp.lt.u32.totalorder %s63_s15, %s189_s0 }
   0x7   :  { %p69_p2 = pnand %p67_p1, %p64_p0 }
   0x9   :  { %72 = shalt.err (!%p69_p2)
}
   0xa   :  { %s73_s20 = scalar_lea.vmem %s17_s10, 256  ;;  %p78_p4 = scmp.lt.s32.totalorder %s17_s10, %s17_s10 }
   0xb   :  { %p74_p3 = scmp.ne.s32.totalorder %s17_s10, %s73_s20  ;;  %p79_p5 = scmp.lt.s32.totalorder %s73_s20, %s73_s20 }
   0xd   :  { %p80_p6 = por %p79_p5, %p78_p4 }
   0xf   :  { %p81_p7 = pnand %p80_p6, %p74_p3 }
  0x11   :  { %84 = shalt.err (!%p81_p7)
}
  0x12   :  { %19 = dma.hbm_to_vmem [thread:$0]  %s189_s0, 256, %s17_s10, [#allocation3]  }
  0x13   :  { %s85_s25 = scalar_lea.hbm %s190_s1, 256 }
  0x14   :  { %p86_p8 = scmp.ne.s32.totalorder %s190_s1, %s85_s25  ;;  %p89_p9 = scmp.lt.u32.totalorder %s85_s25, %s190_s1 }
  0x16   :  { %p91_p10 = pnand %p89_p9, %p86_p8 }
  0x18   :  { %94 = shalt.err (!%p91_p10)
}
  0x19   :  { %s95_s30 = scalar_lea.vmem %s27_s12, 256  ;;  %p100_p12 = scmp.lt.s32.totalorder %s27_s12, %s27_s12 }
  0x1a   :  { %p96_p11 = scmp.ne.s32.totalorder %s27_s12, %s95_s30  ;;  %p101_p13 = scmp.lt.s32.totalorder %s95_s30, %s95_s30 }
  0x1c   :  { %p102_p0 = por %p101_p13, %p100_p12 }
  0x1e   :  { %p103_p1 = pnand %p102_p0, %p96_p11 }
  0x20   :  { %106 = shalt.err (!%p103_p1)
}
  0x21   :  { %29 = dma.hbm_to_vmem [thread:$0]  %s190_s1, 256, %s27_s12, [#allocation6]  }
  0x22   :  { %129 = dma.done.wait [#allocation3], 256  }
  0x23   :  { %130 = vsyncadd [#allocation3], 4294967040 }
  0x24   :  { %131 = dma.done.wait [#allocation6], 256  }
  0x25   :  { %132 = vsyncadd [#allocation6], 4294967040  ;;  %s137_s4 = smov [#allocation7]   ;;  %v36_v0 = vld [vmem:[#allocation2] sm:$0xff]  ;;  %v38_v1 = vld [vmem:[#allocation5] sm:$0xff] }
  0x26   :  { %s50_s5 = sshll.u32 %s137_s4, 4  ;;  %v37_v2 = vld [vmem:[#allocation2 + $0x8] sm:$0xff]  ;;  %v40_v3 = vadd.f32 %v38_v1, %v36_v0  ;;  %v39_v4 = vld [vmem:[#allocation5 + $0x8] sm:$0xff]  ;;  %s51_s5 = int_to_ptr.vmem [resolvable:$true] %s50_s5 }
  0x27   :  { %v41_v5 = vadd.f32 %v39_v4, %v37_v2  ;;  %s107_s6 = scalar_lea.vmem %s51_s5, 256  ;;  %p112_p3 = scmp.lt.s32.totalorder %s51_s5, %s51_s5 }
  0x28   :  { %42 = vst [vmem:[#allocation7] sm:$0xff] %v40_v3  ;;  %p108_p2 = scmp.ne.s32.totalorder %s51_s5, %s107_s6  ;;  %p113_p4 = scmp.lt.s32.totalorder %s107_s6, %s107_s6 }
  0x29   :  { %43 = vst [vmem:[#allocation7 + $0x8] sm:$0xff] %v41_v5 }
  0x2a   :  { %p114_p5 = por %p113_p4, %p112_p3 }
  0x2c   :  { %p115_p6 = pnand %p114_p5, %p108_p2 }
  0x2e   :  { %118 = shalt.err (!%p115_p6)
}
  0x2f   :  { %s119_s8 = scalar_lea.hbm %s191_s2, 256 }
  0x30   :  { %p120_p7 = scmp.ne.s32.totalorder %s191_s2, %s119_s8  ;;  %p123_p8 = scmp.lt.u32.totalorder %s119_s8, %s191_s2 }
  0x32   :  { %p125_p9 = pnand %p123_p8, %p120_p7 }
  0x34   :  { %128 = shalt.err (!%p125_p9)
}
  0x35   :  { %53 = dma.vmem_to_hbm [thread:$0]  %s51_s5, 256, %s191_s2, [#allocation4]  }
  0x36   :  { %133 = dma.done.wait [#allocation4], 256  }
  0x37   :  { %134 = vsyncadd [#allocation4], 4294967040 }
  0x38   :  { %57 = vsyncpa [#allocation3], 1 }
  0x39   :  { %58 = vsyncpa [#allocation6], 1 }
  0x3a   :  { %59 = vsyncpa [#allocation4], 1 }

</bundles_post_ra>
